<compile_context>
chip_gen: v5e
topology: v5e:2x2
jax: 0.10.0
libtpu: 0.0.40
codegen_flags: <defaults>
</compile_context>

<pallas_src>
import functools

import jax
import jax.numpy as jnp
from jax import lax
from jax.experimental import pallas as pl
from jax.experimental.pallas import tpu as pltpu


def _batch_soft_kernel(u_ref, emb_ref, pid_col_ref, pid_row_ref, loss_ref,
                       *, margin, T):
    tb = loss_ref.shape[0]                # query rows handled by this grid step
    B, D = emb_ref.shape

    row0 = pl.multiple_of(pl.program_id(0) * tb, tb)

    keys = emb_ref[...]                   # (B, D) native dtype, fully resident
    q = emb_ref[pl.ds(row0, tb), :]       # (tb, D) query-row tile

    # --- pairwise euclidean distances, Gram form on the MXU ------------------
    # gram[i, j] = q_i . k_j  (contract dim 1 of both operands: no transpose)
    gram = lax.dot_general(q, keys, (((1,), (1,)), ((), ())),
                           preferred_element_type=jnp.float32)        # (tb, B)
    q32 = q.astype(jnp.float32)
    k32 = keys.astype(jnp.float32)
    q_sq = jnp.sum(q32 * q32, axis=1, keepdims=True)                  # (tb, 1)
    # Key squared-norms as a lane-major (1, B) row via a tiny ones-matmul,
    # avoiding an explicit (B, 1) -> (1, B) cross-lane relayout.
    k_sq = lax.dot_general(jnp.ones((1, D), jnp.float32), k32 * k32,
                           (((1,), (1,)), ((), ())),
                           preferred_element_type=jnp.float32)        # (1, B)
    d2 = jnp.maximum(q_sq + k_sq - 2.0 * gram, 0.0)
    cdist = jnp.sqrt(d2 + 1e-12)                                      # (tb, B)

    # --- Gumbel noise (EUP logs; independent of cdist, hides under the MXU) --
    g_pos = -jnp.log(-jnp.log(u_ref[0]))                              # (tb, B)
    g_neg = -jnp.log(-jnp.log(u_ref[1]))                              # (tb, B)

    # --- positive / negative masks from pids ---------------------------------
    mask_pos = pid_col_ref[...] == pid_row_ref[...]                   # (tb, B)

    neg_inf = jnp.float32(-jnp.inf)
    pos_inf = jnp.float32(jnp.inf)
    cdist_max = jnp.where(mask_pos, cdist, neg_inf)   # -inf on negatives
    cdist_min = jnp.where(mask_pos, pos_inf, cdist)   # +inf on positives

    # --- multinomial(softmax(.)) sampling via the Gumbel-max trick -----------
    # TODO(synk): statistically equivalent to torch.multinomial over the same
    # softmax/softmin distributions, but not bit-identical (different RNG).
    inv_T = jnp.float32(1.0 / T)
    score_pos = cdist_max * inv_T + g_pos      # argmax ~ softmax(cdist_max / T)
    score_neg = -cdist_min * inv_T + g_neg     # argmax ~ softmin(cdist_min / T)

    def pick(score):
        # Ties among Gumbel-perturbed finite scores have probability zero, so a
        # plain one-hot against the row max is enough (no iota tie-break).
        row_max = jnp.max(score, axis=1, keepdims=True)
        onehot = score == row_max
        return jnp.sum(jnp.where(onehot, cdist, 0.0), axis=1, keepdims=True)

    positive = pick(score_pos)                                        # (tb, 1)
    negative = pick(score_neg)                                        # (tb, 1)
    x = positive - negative

    # --- _apply_margin --------------------------------------------------------
    if isinstance(margin, (int, float)) and not isinstance(margin, bool):
        loss = jnp.maximum(x + jnp.float32(margin), 0.0)
    elif isinstance(margin, str) and margin.lower() == 'soft':
        # numerically stable softplus: max(x, 0) + log(1 + exp(-|x|))
        loss = jnp.maximum(x, 0.0) + jnp.log(1.0 + jnp.exp(-jnp.abs(x)))
    elif isinstance(margin, str) and margin.lower() == 'none':
        loss = x
    else:
        raise NotImplementedError(
            'The margin %s is not implemented in BatchSoft!' % margin)

    loss_ref[...] = loss.astype(loss_ref.dtype)


def _pick_row_block(B, block_rows):
    """Pick a query-row tile size that divides B (MXU-friendly when possible)."""
    if block_rows is not None:
        block_rows = int(block_rows)
        if B % block_rows != 0:
            raise ValueError("block_rows must divide the batch size")
        return block_rows
    for tb in (256, 128):       # MXU-native-ish tiles; bound VMEM for large B
        if B > tb and B % tb == 0:
            return tb
    return B                    # small batch: single tile


def batch_soft(emb, pids, margin='soft', T=1.0, *, seed=0, key=None,
               block_rows=None, vmem_limit_bytes=None):
    """BatchSoft forward: emb (B, D) float/bf16, pids (B,) int -> loss (B,) f32."""
    emb = jnp.asarray(emb)                 # NOTE: kept in native dtype (no upcast)
    pids = jnp.asarray(pids)
    B, D = emb.shape

    if key is None:
        key = jax.random.PRNGKey(seed)
    # Uniform (0, 1) draws; the Gumbel transform happens inside the kernel.
    u = jax.random.uniform(key, (2, B, B), dtype=jnp.float32,
                           minval=1e-7, maxval=1.0 - 1e-7)

    pid_col = pids.reshape(B, 1).astype(jnp.int32)
    pid_row = pids.reshape(1, B).astype(jnp.int32)

    tb = _pick_row_block(B, block_rows)
    grid = (B // tb,)

    kernel = functools.partial(_batch_soft_kernel, margin=margin, T=float(T))
    out = pl.pallas_call(
        kernel,
        grid=grid,
        out_shape=jax.ShapeDtypeStruct((B, 1), jnp.float32),
        in_specs=[
            pl.BlockSpec((2, tb, B), lambda i: (0, i, 0)),   # uniform noise tile
            pl.BlockSpec((B, D), lambda i: (0, 0)),          # emb, resident keys
            pl.BlockSpec((tb, 1), lambda i: (i, 0)),         # pids column tile
            pl.BlockSpec((1, B), lambda i: (0, 0)),          # pids row (full)
        ],
        out_specs=pl.BlockSpec((tb, 1), lambda i: (i, 0)),
        compiler_params=pltpu.CompilerParams(
            dimension_semantics=("parallel",),               # shard rows (v7x 2 TCs)
            vmem_limit_bytes=vmem_limit_bytes),
    )(u, emb, pid_col, pid_row)
    return out[:, 0]


class BatchSoft:
    """JAX/Pallas counterpart of the PyTorch BatchSoft module (forward only)."""

    def __init__(self, m='soft', T=1.0, endpoint_name='triplet'):
        self.name = 'BatchSoft(m={}, T={})'.format(m, T)
        self.m = m
        self.T = T
        self.endpoint_name = endpoint_name
        # TODO(synk): tensorboard min/max/mean logging from the torch module is
        # not translated in this standalone script.

    def __call__(self, endpoints, data, seed=0):
        pids = data['pid']
        logit = endpoints[self.endpoint_name]
        return batch_soft(logit, pids, self.m, self.T, seed=seed)


def _reference_batch_soft(emb, pids, margin, T, seed):
    """Pure-JAX reference (torch-style broadcast-diff cdist + Gumbel-max)."""
    B, D = emb.shape
    a = emb.astype(jnp.float32)
    diff = a[:, None, :] - a[None, :, :]
    cdist = jnp.sqrt(jnp.sum(diff * diff, axis=2) + 1e-12)
    u = jax.random.uniform(jax.random.PRNGKey(seed), (2, B, B),
                           dtype=jnp.float32, minval=1e-7, maxval=1.0 - 1e-7)
    g = -jnp.log(-jnp.log(u))
    mask_pos = pids[:, None] == pids[None, :]
    cdist_max = jnp.where(mask_pos, cdist, -jnp.inf)
    cdist_min = jnp.where(mask_pos, jnp.inf, cdist)
    idx_pos = jnp.argmax(cdist_max / T + g[0], axis=1)
    idx_neg = jnp.argmax(-cdist_min / T + g[1], axis=1)
    rows = jnp.arange(B)
    x = cdist[rows, idx_pos] - cdist[rows, idx_neg]
    if isinstance(margin, (int, float)) and not isinstance(margin, bool):
        return jnp.maximum(x + margin, 0.0)
    if isinstance(margin, str) and margin.lower() == 'soft':
        return jax.nn.softplus(x)
    return x


if __name__ == "__main__":
    key = jax.random.PRNGKey(0)
    k1, k2 = jax.random.split(key)

    # --- small f32 case, single row tile, compared against a pure-JAX ref ----
    B, D = 8, 32
    emb = jax.random.normal(k1, (B, D), dtype=jnp.float32)
    # 4 identities x 2 samples each -> every row has positives and negatives
    pids = jnp.array([0, 0, 1, 1, 2, 2, 3, 3], dtype=jnp.int32)

    module = BatchSoft(m='soft', T=1.0)
    loss = module({'triplet': emb}, {'pid': pids}, seed=1234)
    loss = jax.block_until_ready(loss)
    ref = _reference_batch_soft(emb, pids, 'soft', 1.0, seed=1234)

    assert loss.shape == (B,)
    assert bool(jnp.all(jnp.isfinite(loss)))
    assert bool(jnp.all(loss >= 0.0))                    # softplus is >= 0
    assert bool(jnp.allclose(loss, ref, atol=2e-3, rtol=1e-3))

    # --- bf16 embeddings + multi-tile row grid + float margin ----------------
    B2, D2 = 16, 32
    emb2 = jax.random.normal(k2, (B2, D2), dtype=jnp.float32).astype(jnp.bfloat16)
    pids2 = jnp.arange(B2, dtype=jnp.int32) // 2         # 8 ids x 2 samples
    loss2 = batch_soft(emb2, pids2, margin=0.5, T=0.5, seed=7, block_rows=8)
    loss2 = jax.block_until_ready(loss2)

    assert loss2.shape == (B2,)
    assert bool(jnp.all(jnp.isfinite(loss2)))
    assert bool(jnp.all(loss2 >= 0.0))                   # hinge with margin 0.5

    print("KERNEL_OK")
</pallas_src>

<mosaic_0001>
module attributes {stable_mosaic.version = 11 : i64} {
  func.func @_batch_soft_kernel(%arg0: i32, %arg1: memref<2x8x8xf32, #tpu.memory_space<vmem>>, %arg2: memref<8x32xf32, #tpu.memory_space<vmem>>, %arg3: memref<8x1xi32, #tpu.memory_space<vmem>>, %arg4: memref<1x8xi32, #tpu.memory_space<vmem>>, %arg5: memref<8x1xf32, #tpu.memory_space<vmem>>) attributes {dimension_semantics = [#tpu.dimension_semantics<parallel>], iteration_bounds = array<i64: 1>, scalar_prefetch = 0 : i64, scratch_operands = 0 : i64, tpu.core_type = #tpu.core_type<tc>, window_params = [{transform_indices = @transform_0, window_bounds = array<i64: 2, 8, 8>}, {pipeline_mode = #tpu.pipeline_mode<synchronous>, transform_indices = @transform_1, window_bounds = array<i64: 8, 32>}, {transform_indices = @transform_2, window_bounds = array<i64: 8, 1>}, {pipeline_mode = #tpu.pipeline_mode<synchronous>, transform_indices = @transform_3, window_bounds = array<i64: 1, 8>}, {transform_indices = @transform_4, window_bounds = array<i64: 8, 1>}]} {
    %c8_i32 = arith.constant 8 : i32
    %0 = arith.muli %arg0, %c8_i32 : i32
    %1 = tpu.assume_multiple %0, 8 : i32
    %c0 = arith.constant 0 : index
    %c0_0 = arith.constant 0 : index
    %2 = vector.load %arg2[%c0, %c0_0] : memref<8x32xf32, #tpu.memory_space<vmem>>, vector<8x32xf32>
    %3 = arith.index_cast %1 : i32 to index
    %c0_1 = arith.constant 0 : index
    %4 = vector.load %arg2[%3, %c0_1] : memref<8x32xf32, #tpu.memory_space<vmem>>, vector<8x32xf32>
    %cst = arith.constant dense<0.000000e+00> : vector<8x8xf32>
    %5 = tpu.matmul %4, %2, %cst {dimension_numbers = #tpu.dot_dimension_numbers<[1], [1], [0], [0], [0, 0, 1, 0], [], []>} : vector<8x32xf32>, vector<8x32xf32>, vector<8x8xf32> -> vector<8x8xf32>
    %6 = arith.mulf %4, %4 : vector<8x32xf32>
    %cst_2 = arith.constant dense<0.000000e+00> : vector<8xf32>
    %7 = vector.multi_reduction <add>, %6, %cst_2 [1] : vector<8x32xf32> to vector<8xf32>
    %8 = vector.shape_cast %7 : vector<8xf32> to vector<8x1xf32>
    %cst_3 = arith.constant 1.000000e+00 : f32
    %9 = vector.broadcast %cst_3 : f32 to vector<1x32xf32>
    %10 = arith.mulf %2, %2 : vector<8x32xf32>
    %cst_4 = arith.constant dense<0.000000e+00> : vector<1x8xf32>
    %11 = tpu.matmul %9, %10, %cst_4 {dimension_numbers = #tpu.dot_dimension_numbers<[1], [1], [0], [0], [0, 0, 1, 0], [], []>} : vector<1x32xf32>, vector<8x32xf32>, vector<1x8xf32> -> vector<1x8xf32>
    %12 = vector.broadcast %8 : vector<8x1xf32> to vector<8x8xf32>
    %13 = vector.broadcast %11 : vector<1x8xf32> to vector<8x8xf32>
    %14 = arith.addf %12, %13 : vector<8x8xf32>
    %cst_5 = arith.constant 2.000000e+00 : f32
    %15 = vector.broadcast %cst_5 : f32 to vector<8x8xf32>
    %16 = arith.mulf %15, %5 : vector<8x8xf32>
    %17 = arith.subf %14, %16 : vector<8x8xf32>
    %cst_6 = arith.constant 0.000000e+00 : f32
    %18 = vector.broadcast %cst_6 : f32 to vector<8x8xf32>
    %19 = arith.maximumf %17, %18 : vector<8x8xf32>
    %cst_7 = arith.constant 9.99999996E-13 : f32
    %20 = vector.broadcast %cst_7 : f32 to vector<8x8xf32>
    %21 = arith.addf %19, %20 : vector<8x8xf32>
    %22 = math.sqrt %21 : vector<8x8xf32>
    %c0_8 = arith.constant 0 : index
    %c0_9 = arith.constant 0 : index
    %c0_10 = arith.constant 0 : index
    %23 = vector.load %arg1[%c0_8, %c0_9, %c0_10] : memref<2x8x8xf32, #tpu.memory_space<vmem>>, vector<1x8x8xf32>
    %24 = vector.shape_cast %23 : vector<1x8x8xf32> to vector<8x8xf32>
    %25 = math.log %24 : vector<8x8xf32>
    %cst_11 = arith.constant 0.000000e+00 : f32
    %26 = vector.broadcast %cst_11 : f32 to vector<8x8xf32>
    %27 = arith.subf %26, %25 : vector<8x8xf32>
    %28 = math.log %27 : vector<8x8xf32>
    %cst_12 = arith.constant 0.000000e+00 : f32
    %29 = vector.broadcast %cst_12 : f32 to vector<8x8xf32>
    %30 = arith.subf %29, %28 : vector<8x8xf32>
    %c1 = arith.constant 1 : index
    %c0_13 = arith.constant 0 : index
    %c0_14 = arith.constant 0 : index
    %31 = vector.load %arg1[%c1, %c0_13, %c0_14] : memref<2x8x8xf32, #tpu.memory_space<vmem>>, vector<1x8x8xf32>
    %32 = vector.shape_cast %31 : vector<1x8x8xf32> to vector<8x8xf32>
    %33 = math.log %32 : vector<8x8xf32>
    %cst_15 = arith.constant 0.000000e+00 : f32
    %34 = vector.broadcast %cst_15 : f32 to vector<8x8xf32>
    %35 = arith.subf %34, %33 : vector<8x8xf32>
    %36 = math.log %35 : vector<8x8xf32>
    %cst_16 = arith.constant 0.000000e+00 : f32
    %37 = vector.broadcast %cst_16 : f32 to vector<8x8xf32>
    %38 = arith.subf %37, %36 : vector<8x8xf32>
    %c0_17 = arith.constant 0 : index
    %c0_18 = arith.constant 0 : index
    %39 = vector.load %arg3[%c0_17, %c0_18] : memref<8x1xi32, #tpu.memory_space<vmem>>, vector<8x1xi32>
    %c0_19 = arith.constant 0 : index
    %c0_20 = arith.constant 0 : index
    %40 = vector.load %arg4[%c0_19, %c0_20] : memref<1x8xi32, #tpu.memory_space<vmem>>, vector<1x8xi32>
    %41 = vector.broadcast %39 : vector<8x1xi32> to vector<8x8xi32>
    %42 = vector.broadcast %40 : vector<1x8xi32> to vector<8x8xi32>
    %43 = arith.cmpi eq, %41, %42 : vector<8x8xi32>
    %cst_21 = arith.constant 0xFF800000 : f32
    %44 = vector.broadcast %cst_21 : f32 to vector<8x8xf32>
    %45 = arith.select %43, %22, %44 : vector<8x8xi1>, vector<8x8xf32>
    %cst_22 = arith.constant 0x7F800000 : f32
    %46 = vector.broadcast %cst_22 : f32 to vector<8x8xf32>
    %47 = arith.select %43, %46, %22 : vector<8x8xi1>, vector<8x8xf32>
    %cst_23 = arith.constant 1.000000e+00 : f32
    %48 = vector.broadcast %cst_23 : f32 to vector<8x8xf32>
    %49 = arith.mulf %45, %48 : vector<8x8xf32>
    %50 = arith.addf %49, %30 : vector<8x8xf32>
    %cst_24 = arith.constant 0.000000e+00 : f32
    %51 = vector.broadcast %cst_24 : f32 to vector<8x8xf32>
    %52 = arith.subf %51, %47 : vector<8x8xf32>
    %cst_25 = arith.constant 1.000000e+00 : f32
    %53 = vector.broadcast %cst_25 : f32 to vector<8x8xf32>
    %54 = arith.mulf %52, %53 : vector<8x8xf32>
    %55 = arith.addf %54, %38 : vector<8x8xf32>
    %cst_26 = arith.constant dense<0xFF800000> : vector<8xf32>
    %56 = vector.multi_reduction <maximumf>, %50, %cst_26 [1] : vector<8x8xf32> to vector<8xf32>
    %57 = vector.shape_cast %56 : vector<8xf32> to vector<8x1xf32>
    %58 = vector.broadcast %57 : vector<8x1xf32> to vector<8x8xf32>
    %59 = arith.cmpf oeq, %50, %58 : vector<8x8xf32>
    %cst_27 = arith.constant 0.000000e+00 : f32
    %60 = vector.broadcast %cst_27 : f32 to vector<8x8xf32>
    %61 = arith.select %59, %22, %60 : vector<8x8xi1>, vector<8x8xf32>
    %cst_28 = arith.constant dense<0.000000e+00> : vector<8xf32>
    %62 = vector.multi_reduction <add>, %61, %cst_28 [1] : vector<8x8xf32> to vector<8xf32>
    %63 = vector.shape_cast %62 : vector<8xf32> to vector<8x1xf32>
    %cst_29 = arith.constant dense<0xFF800000> : vector<8xf32>
    %64 = vector.multi_reduction <maximumf>, %55, %cst_29 [1] : vector<8x8xf32> to vector<8xf32>
    %65 = vector.shape_cast %64 : vector<8xf32> to vector<8x1xf32>
    %66 = vector.broadcast %65 : vector<8x1xf32> to vector<8x8xf32>
    %67 = arith.cmpf oeq, %55, %66 : vector<8x8xf32>
    %cst_30 = arith.constant 0.000000e+00 : f32
    %68 = vector.broadcast %cst_30 : f32 to vector<8x8xf32>
    %69 = arith.select %67, %22, %68 : vector<8x8xi1>, vector<8x8xf32>
    %cst_31 = arith.constant dense<0.000000e+00> : vector<8xf32>
    %70 = vector.multi_reduction <add>, %69, %cst_31 [1] : vector<8x8xf32> to vector<8xf32>
    %71 = vector.shape_cast %70 : vector<8xf32> to vector<8x1xf32>
    %72 = arith.subf %63, %71 : vector<8x1xf32>
    %cst_32 = arith.constant 0.000000e+00 : f32
    %73 = vector.broadcast %cst_32 : f32 to vector<8x1xf32>
    %74 = arith.maximumf %72, %73 : vector<8x1xf32>
    %75 = math.absf %72 : vector<8x1xf32>
    %cst_33 = arith.constant 0.000000e+00 : f32
    %76 = vector.broadcast %cst_33 : f32 to vector<8x1xf32>
    %77 = arith.subf %76, %75 : vector<8x1xf32>
    %78 = math.exp %77 : vector<8x1xf32>
    %cst_34 = arith.constant 1.000000e+00 : f32
    %79 = vector.broadcast %cst_34 : f32 to vector<8x1xf32>
    %80 = arith.addf %79, %78 : vector<8x1xf32>
    %81 = math.log %80 : vector<8x1xf32>
    %82 = arith.addf %74, %81 : vector<8x1xf32>
    %c0_35 = arith.constant 0 : index
    %c0_36 = arith.constant 0 : index
    %83 = vector.load %arg5[%c0_35, %c0_36] : memref<8x1xf32, #tpu.memory_space<vmem>>, vector<8x1xf32>
    tpu.vector_store %arg5[%c0_35, %c0_36], %82 {strides = array<i32>} : memref<8x1xf32, #tpu.memory_space<vmem>>, vector<8x1xf32>,
    return
  }
  func.func @transform_0(%arg0: i32) -> (i32, i32, i32) {
    %c0_i32 = arith.constant 0 : i32
    %c0_i32_0 = arith.constant 0 : i32
    %c0_i32_1 = arith.constant 0 : i32
    return %c0_i32, %arg0, %c0_i32_0 : i32, i32, i32
  }
  func.func @transform_1(%arg0: i32) -> (i32, i32) {
    %c0_i32 = arith.constant 0 : i32
    %c0_i32_0 = arith.constant 0 : i32
    %c0_i32_1 = arith.constant 0 : i32
    return %c0_i32, %c0_i32_0 : i32, i32
  }
  func.func @transform_2(%arg0: i32) -> (i32, i32) {
    %c0_i32 = arith.constant 0 : i32
    %c0_i32_0 = arith.constant 0 : i32
    return %arg0, %c0_i32 : i32, i32
  }
  func.func @transform_3(%arg0: i32) -> (i32, i32) {
    %c0_i32 = arith.constant 0 : i32
    %c0_i32_0 = arith.constant 0 : i32
    %c0_i32_1 = arith.constant 0 : i32
    return %c0_i32, %c0_i32_0 : i32, i32
  }
  func.func @transform_4(%arg0: i32) -> (i32, i32) {
    %c0_i32 = arith.constant 0 : i32
    %c0_i32_0 = arith.constant 0 : i32
    return %arg0, %c0_i32 : i32, i32
  }
}

</mosaic_0001>

<bundles_post_ra>
// kernel: tpu_custom_call.1
= control target key start
LH: loop header
LB: loop body
LE: loop exit
PB: predicated region body
PF: predicated region fallthrough
CT: control target
= control target key end

     0   :  { %9 = vsyncpa [#allocation3], 0  ;;  %s225_s18 = smov [#allocation2]   ;;  %s226_s20 = smov 128   ;;  %s274_s0 = inlined_call_operand.hbm [shape: f32[2,8,8], index: 0, kind: input, shape index: {}]   ;;  %s275_s1 = inlined_call_operand.vmem [shape: f32[8,32], index: 1, kind: input, shape index: {}]   ;;  %s276_s2 = inlined_call_operand.vmem [shape: s32[8,1], index: 2, kind: input, shape index: {}]   ;;  %s277_s3 = inlined_call_operand.vmem [shape: s32[1,8], index: 3, kind: input, shape index: {}]   ;;  %s278_s4 = inlined_call_operand.vmem [shape: f32[8,1], index: 4, kind: output, shape index: {}]  }
   0x1   :  { %s14_s17 = sshll.u32 %s274_s0, 4  ;;  %s16_s19 = sshll.u32 %s225_s18, 4  ;;  %s15_s17 = int_to_ptr.hbm [resolvable:$true] %s14_s17  ;;  %s17_s19 = int_to_ptr.vmem [resolvable:$true] %s16_s19 }
   0x2   :  { %s227_s21 = smov 8  }
   0x3   :  { %22 = dma.hbm_to_vmem [thread:$0]  %s15_s17, 256, %s17_s19, [#allocation3], %s226_s20, %s226_s20, %s227_s21  }
   0x4   :  { %223 = dma.done.wait [#allocation3], 256  }
   0x5   :  { %224 = vsyncadd [#allocation3], 4294967040  ;;  %v228_v0 = vmov 0   ;;  %v34_v1 = vld [vmem:[%s275_s1] sm:$0xff]  ;;  %vm37_vm0 = vcmask 261120   ;;  %v229_v4 = vmov 1.0  }
   0x6   :  { %183 = vset.pattern.permute.xlu0 %v228_v0  ;;  %v68_v2 = vmul.f32 %v34_v1, %v34_v1  ;;  %174 = vmatpush.xpose.msk.msra.mxu0 %vm37_vm0, %v34_v1  ;;  %v128_v5 = vld [vmem:[%s276_s2] sm:$0xff]  ;;  %v121_v12 = vld [vmem:[#allocation2 + $0x8] sm:$0xff]  ;;  %vm140_vm4 = vcmask 64512   ;;  %vm167_vm7 = vcmask 7168  }
   0x7   :  { %v113_v6 = vld [vmem:[#allocation2] sm:$0xff] }
   0x8   :  { %176 = vmatpush.xpose.msk.msra.mxu1 %vm37_vm0, %v68_v2  ;;  %v65_v3 = vsel %vm37_vm0, %v68_v2, 0.0  ;;  %185 = vlog2.f32 %v113_v6  ;;  %v184_v29 = vld [vmem:[%s277_s3] ss:$0 sm:$0xff] }
   0x9   :  { %175 = vmatmul.msk.f32.vlgmr.msra.gmra.mxu0 %vm37_vm0, %v34_v1  ;;  %66 = vadd.xlane.f32.xlu0 %v65_v3  ;;  %187 = vlog2.f32 %v121_v12 }
   0xb   :  { %177 = vmatmul.msk.f32.vlgmr.msra.gmra.mxu1 %vm37_vm0, %v229_v4 }
   0xe   :  { %v186_v14 = vpop.eup %185 }
   0xf   :  { %v115_v17 = vmul.f32 0.6931472, %v186_v14  ;;  %v188_v19 = vpop.eup %187 }
  0x10   :  { %v123_v21 = vmul.f32 0.6931472, %v188_v19 }
  0x11   :  { %v116_v20 = vsub.f32 0.0, %v115_v17 }
  0x12   :  { %v124_v24 = vsub.f32 0.0, %v123_v21 }
  0x1d   :  { %131 = vperm.xlu0 %183, %v128_v5  }
  0x7c   :  { %v67_v9 = vpop.xlane.xlu0 %66 }
  0x86   :  { %v61_v7 = vpop.f32.mrf.mxu0 }
  0x87   :  { %v97_v11 = vmul.f32 2.0, %v61_v7 }
  0x88   :  { %v92_v8 = vpop.f32.mrf.mxu1 }
  0x89   :  { %v95_v10 = vperm.slane %v92_v8, 0 }
  0x8b   :  { %v96_v13 = vadd.f32 %v95_v10, %v67_v9 }
  0x8d   :  { %v98_v15 = vsub.f32 %v96_v13, %v97_v11 }
  0x8f   :  { %v99_v16 = vmax.f32 %v98_v15, 0.0  ;;  %v132_v31 = vpop.permute.xlu0 %131 }
  0x90   :  { %vm134_vm2 = vcmp.eq.s32.totalorder %v132_v31, %v184_v29 }
  0x91   :  { %v100_v18 = vadd.f32 1e-12, %v99_v16 }
  0x93   :  { %189 = vrsqrt.f32 %v100_v18  ;;  %vm108_vm1 = vcmp.eq.f32.partialorder %v100_v18, inf  ;;  %v111_v35 = vand.u32 2147483648, %v100_v18  ;;  %vm110_vm3 = vcmp.eq.f32.partialorder %v100_v18, 0.0 }
  0x94   :  { %191 = vlog2.f32 %v116_v20 }
  0x95   :  { %193 = vlog2.f32 %v124_v24 }
  0x99   :  { %v190_v22 = vpop.eup %189 }
  0x9a   :  { %v102_v23 = vmul.f32 %v190_v22, %v100_v18  ;;  %v192_v26 = vpop.eup %191 }
  0x9b   :  { %v118_v30 = vmul.f32 0.6931472, %v192_v26  ;;  %v194_v33 = vpop.eup %193 }
  0x9c   :  { %v103_v25 = vmul.f32 %v190_v22, %v102_v23  ;;  %v126_v39 = vmul.f32 0.6931472, %v194_v33 }
  0x9d   :  { %v119_v36 = vsub.f32 0.0, %v118_v30 }
  0x9e   :  { %v104_v27 = vmul.f32 0.5, %v103_v25  ;;  %v127_v45 = vsub.f32 0.0, %v126_v39 }
  0xa0   :  { %v105_v28 = vsub.f32 1.5, %v104_v27 }
  0xa2   :  { %v106_v32 = vmul.f32 %v190_v22, %v105_v28 }
  0xa4   :  { %v107_v34 = vmul.f32 %v106_v32, %v100_v18 }
  0xa6   :  { %v109_v37 = vsel %vm108_vm1, %v100_v18, %v107_v34 }
  0xa7   :  { %v112_v38 = vsel %vm110_vm3, %v111_v35, %v109_v37 }
  0xa8   :  { %v135_v40 = vsel %vm134_vm2, %v112_v38, -inf  ;;  %v136_v41 = vsel %vm134_vm2, inf, %v112_v38 }
  0xa9   :  { %v137_v42 = vadd.f32 %v135_v40, %v119_v36  ;;  %v138_v43 = vsub.f32 0.0, %v136_v41 }
  0xab   :  { %v141_v44 = vsel %vm140_vm4, %v137_v42, -inf  ;;  %v139_v46 = vadd.f32 %v138_v43, %v127_v45 }
  0xac   :  { %142 = vmax.xlane.f32.xlu1 %v141_v44 }
  0xad   :  { %v149_v47 = vsel %vm140_vm4, %v139_v46, -inf }
  0xb4   :  { %150 = vmax.xlane.f32.xlu1 %v149_v47 }
 0x11f   :  { %v143_v48 = vpop.xlane.xlu1 %142 }
 0x120   :  { %vm144_vm5 = vcmp.eq.f32.partialorder %v137_v42, %v143_v48 }
 0x121   :  { %v145_v49 = vsel %vm144_vm5, %v112_v38, 0.0 }
 0x122   :  { %v146_v50 = vsel %vm140_vm4, %v145_v49, 0.0 }
 0x123   :  { %147 = vadd.xlane.f32.xlu2 %v146_v50 }
 0x127   :  { %v151_v51 = vpop.xlane.xlu1 %150 }
 0x128   :  { %vm152_vm6 = vcmp.eq.f32.partialorder %v139_v46, %v151_v51 }
 0x129   :  { %v153_v52 = vsel %vm152_vm6, %v112_v38, 0.0 }
 0x12a   :  { %v154_v53 = vsel %vm140_vm4, %v153_v52, 0.0 }
 0x12b   :  { %155 = vadd.xlane.f32.xlu2 %v154_v53 }
 0x196   :  { %v148_v54 = vpop.xlane.xlu2 %147 }
 0x19e   :  { %v156_v55 = vpop.xlane.xlu2 %155 }
 0x19f   :  { %v157_v56 = vsub.f32 %v148_v54, %v156_v55 }
 0x1a1   :  { %v159_v57 = vand.u32 2147483647, %v157_v56  ;;  %v158_v63 = vmax.f32 %v157_v56, 0.0 }
 0x1a3   :  { %v160_v58 = vsub.f32 0.0, %v159_v57 }
 0x1a5   :  { %v161_v59 = vmul.f32 1.442695, %v160_v58 }
 0x1a7   :  { %195 = vpow2.f32 %v161_v59 }
 0x1ad   :  { %v196_v60 = vpop.eup %195 }
 0x1ae   :  { %v163_v61 = vadd.f32 1.0, %v196_v60 }
 0x1b0   :  { %197 = vlog2.f32 %v163_v61 }
 0x1b6   :  { %v198_v62 = vpop.eup %197 }
 0x1b7   :  { %v165_v0 = vmul.f32 0.6931472, %v198_v62 }
 0x1b9   :  { %v166_v1 = vadd.f32 %v165_v0, %v158_v63 }
 0x1bb   :  { %168 = vst.msk [vmem:[%s278_s4] sm:$0xff] %vm167_vm7, %v166_v1 }
 0x1bc   :  { %173 = vsyncpa [#allocation3], 1 }

</bundles_post_ra>
